<compile_context>
chip_gen: v7x
topology: tpu7x:2x2x1
jax: 0.10.0
libtpu: 0.0.40
codegen_flags: <defaults>
</compile_context>

<pallas_src>
import functools

import jax
import jax.numpy as jnp
import numpy as np
from jax.experimental import pallas as pl
from jax.experimental.pallas import tpu as pltpu


def _sigmoid(v):
    # tanh-based form: numerically stable, runs on the EUP slot.
    return 0.5 * (jnp.tanh(0.5 * v) + 1.0)


def se_attention_kernel(x_ref, w1t_ref, w2t_ref, o_ref, *, w, hw_real):
    x = x_ref[...]                                   # (Bt, C, HWp) f32, lane-dense spatial
    bt, c, hwp = x.shape
    inv_hw = 1.0 / float(hw_real)

    # One hoisted iota; all boundary / pad masks derived from it.
    idx = jax.lax.broadcasted_iota(jnp.int32, (1, 1, hwp), 2)
    valid = idx < hw_real          # real (non-padded) spatial lanes
    col = idx % w
    m_left = col != 0              # valid for shift d = -1  (left neighbor)
    m_right = col != (w - 1)       # valid for shift d = +1  (right neighbor)
    m_up = idx >= w                # valid for shift d = -w  (row above)
    m_down = idx < (hw_real - w)   # valid for shift d = +w  (row below); excludes pad

    # ---- squeeze: global average pool over spatial dims -> (Bt, C)
    # Padded lanes are zero in the wrapper, so a full-lane sum is exact.
    pooled = jnp.sum(x, axis=2) * inv_hw

    # ---- excite (batched over the whole tile): Linear -> ReLU -> Linear -> Sigmoid
    h = jnp.maximum(
        jnp.dot(pooled, w1t_ref[...], preferred_element_type=jnp.float32), 0.0)   # (Bt, hid)
    y = _sigmoid(
        jnp.dot(h, w2t_ref[...], preferred_element_type=jnp.float32))             # (Bt, C)

    # ---- quality score: depthwise 3x3 Laplacian (zero padding=1), separable via
    # masked XLU rolls on the flattened spatial axis.
    def sh(t, d):
        # shifted[..., i] = t[..., i + d] (wraps; caller masks the wrapped entries)
        return pltpu.roll(t, shift=(-d) % hwp, axis=2)

    vert = x + jnp.where(m_up, sh(x, -w), 0.0) + jnp.where(m_down, sh(x, w), 0.0)
    box = vert + jnp.where(m_left, sh(vert, -1), 0.0) + jnp.where(m_right, sh(vert, 1), 0.0)
    lap = jnp.where(valid, 9.0 * x - box, 0.0)         # 8*center - 8 neighbors; pad zeroed

    # ---- two-pass unbiased variance over the real spatial lanes (matches torch .var())
    mean = jnp.sum(lap, axis=2, keepdims=True) * inv_hw
    dev = jnp.where(valid, lap - mean, 0.0)
    var = jnp.sum(dev * dev, axis=2) * (1.0 / float(max(hw_real - 1, 1)))
    quality = _sigmoid(var)                             # (Bt, C)

    # ---- rescale input
    o_ref[...] = x * (y * quality)[:, :, None]


def _tpu_vmem_capacity_bytes():
    try:
        info = pltpu.get_tpu_info()
        cap = getattr(info, "vmem_capacity_bytes", None)
        if cap:
            return int(cap)
    except Exception:
        pass
    return 64 << 20    # conservative fallback (v7x per-TC VMEM)


def _pick_batch_tile(b, c, hwp, itemsize, tile_budget_bytes):
    """Largest batch tile whose (C, HWp) slab stays under the per-tile budget, capped
    at ceil(B/2) so the 'parallel' batch grid has >= 2 steps (v7x megacore), and
    rounded down to a multiple of 8 when large (sublane-aligned matmul M dim)."""
    per_batch = max(1, c * hwp * itemsize)
    max_bt = max(1, tile_budget_bytes // per_batch)
    if b > 1:
        max_bt = min(max_bt, -(-b // 2))   # keep at least 2 grid steps
    bt = min(b, max_bt)
    if bt >= 8:
        bt -= bt % 8
    return max(1, bt)


def se_attention(x, w1, w2):
    b, c, h, w = x.shape
    hid = w1.shape[0]
    hw = h * w
    hwp = ((hw + 127) // 128) * 128        # lane-dense spatial axis (pad to 128)

    xf = x.reshape(b, c, hw)
    if hwp != hw:
        xf = jnp.pad(xf, ((0, 0), (0, 0), (0, hwp - hw)))
    w1t = w1.T                             # (C, hid) for (Bt,C)@(C,hid)
    w2t = w2.T                             # (hid, C) for (Bt,hid)@(hid,C)

    # VMEM budget per generation: leave 16 MiB headroom for Mosaic scratch/semaphores;
    # live set per grid step ~ 8 x-sized tiles (2 in-dbuf + 2 out-dbuf + ~4 temps).
    vmem_cap = _tpu_vmem_capacity_bytes()
    vmem_limit = max(32 << 20, min(vmem_cap - (16 << 20), vmem_cap))
    tile_budget = vmem_limit // 8

    bt = _pick_batch_tile(b, c, hwp, x.dtype.itemsize, tile_budget)
    grid = (pl.cdiv(b, bt),)

    itemsize = x.dtype.itemsize
    cost = pl.CostEstimate(
        flops=2 * b * c * hid * 2 + 22 * b * c * hw,   # tiny matmuls + elementwise chain
        transcendentals=2 * b * c,                     # two sigmoids per (b, c)
        bytes_accessed=2 * b * c * hw * itemsize + 2 * c * hid * itemsize,
    )

    out = pl.pallas_call(
        functools.partial(se_attention_kernel, w=w, hw_real=hw),
        out_shape=jax.ShapeDtypeStruct((b, c, hwp), x.dtype),
        grid=grid,
        in_specs=[
            pl.BlockSpec((bt, c, hwp), lambda i: (i, 0, 0)),
            pl.BlockSpec((c, hid), lambda i: (0, 0)),
            pl.BlockSpec((hid, c), lambda i: (0, 0)),
        ],
        out_specs=pl.BlockSpec((bt, c, hwp), lambda i: (i, 0, 0)),
        compiler_params=pltpu.CompilerParams(
            dimension_semantics=("parallel",),
            vmem_limit_bytes=int(vmem_limit),
        ),
        cost_estimate=cost,
    )(xf, w1t, w2t)

    if hwp != hw:
        out = out[:, :, :hw]
    return out.reshape(b, c, h, w)


def se_attention_reference(x, w1, w2):
    """Pure-JAX reference mirroring the PyTorch forward (depthwise Laplacian)."""
    pooled = x.mean(axis=(2, 3))                               # (B, C)
    h = jnp.maximum(pooled @ w1.T, 0.0)
    y = jax.nn.sigmoid(h @ w2.T)                               # (B, C)
    H, W = x.shape[2], x.shape[3]
    xp = jnp.pad(x, ((0, 0), (0, 0), (1, 1), (1, 1)))
    box = sum(xp[:, :, i:i + H, j:j + W] for i in range(3) for j in range(3))
    lap = 9.0 * x - box
    var = lap.var(axis=(2, 3), ddof=1)                         # unbiased, like torch .var()
    q = jax.nn.sigmoid(var)
    return x * (y * q)[:, :, None, None]


def _run_case(key, b, c, h, w, reduction):
    hid = max(1, c // reduction)
    kx, k1, k2 = jax.random.split(key, 3)
    x = 0.5 * jax.random.normal(kx, (b, c, h, w), dtype=jnp.float32)
    # nn.Linear weights, shape (out_features, in_features), bias=False.
    w1 = 0.05 * jax.random.normal(k1, (hid, c), dtype=jnp.float32)
    w2 = 0.05 * jax.random.normal(k2, (c, hid), dtype=jnp.float32)
    out = jax.block_until_ready(se_attention(x, w1, w2))
    ref = jax.block_until_ready(se_attention_reference(x, w1, w2))
    np.testing.assert_allclose(np.asarray(out), np.asarray(ref), rtol=2e-4, atol=2e-4)


if __name__ == "__main__":
    key = jax.random.PRNGKey(0)
    k0, k1 = jax.random.split(key)
    # Lane-aligned spatial case (H*W multiple of 128), grid split across 2 steps.
    _run_case(k0, b=2, c=32, h=16, w=16, reduction=4)
    # Padded-spatial + odd-batch case (14x14 -> 196 padded to 256, cdiv grid, partial tile).
    _run_case(k1, b=3, c=16, h=14, w=14, reduction=4)
    print("KERNEL_OK")
</pallas_src>

<mosaic_0001>
module attributes {stable_mosaic.version = 11 : i64} {
  func.func @se_attention_kernel(%arg0: i32, %arg1: memref<1x32x256xf32, #tpu.memory_space<vmem>>, %arg2: memref<32x8xf32, #tpu.memory_space<vmem>>, %arg3: memref<8x32xf32, #tpu.memory_space<vmem>>, %arg4: memref<1x32x256xf32, #tpu.memory_space<vmem>>) attributes {dimension_semantics = [#tpu.dimension_semantics<parallel>], iteration_bounds = array<i64: 2>, scalar_prefetch = 0 : i64, scratch_operands = 0 : i64, tpu.core_type = #tpu.core_type<tc>, window_params = [{transform_indices = @transform_0, window_bounds = array<i64: 1, 32, 256>}, {pipeline_mode = #tpu.pipeline_mode<synchronous>, transform_indices = @transform_1, window_bounds = array<i64: 32, 8>}, {pipeline_mode = #tpu.pipeline_mode<synchronous>, transform_indices = @transform_2, window_bounds = array<i64: 8, 32>}, {transform_indices = @transform_3, window_bounds = array<i64: 1, 32, 256>}]} {
    %c0 = arith.constant 0 : index
    %c0_0 = arith.constant 0 : index
    %c0_1 = arith.constant 0 : index
    %0 = vector.load %arg1[%c0, %c0_0, %c0_1] : memref<1x32x256xf32, #tpu.memory_space<vmem>>, vector<1x32x256xf32>
    %1 = tpu.iota {dimensions = array<i32: 2>} : vector<1x1x256xi32>
    %c256_i32 = arith.constant 256 : i32
    %2 = vector.broadcast %c256_i32 : i32 to vector<1x1x256xi32>
    %3 = arith.cmpi slt, %1, %2 : vector<1x1x256xi32>
    %c16_i32 = arith.constant 16 : i32
    %c0_i32 = arith.constant 0 : i32
    %4 = arith.cmpi eq, %c16_i32, %c0_i32 : i32
    %c1_i32 = arith.constant 1 : i32
    %5 = arith.select %4, %c1_i32, %c16_i32 : i32
    %6 = vector.broadcast %5 : i32 to vector<1x1x256xi32>
    %7 = arith.remsi %1, %6 : vector<1x1x256xi32>
    %c0_i32_2 = arith.constant 0 : i32
    %8 = vector.broadcast %c0_i32_2 : i32 to vector<1x1x256xi32>
    %9 = arith.cmpi ne, %7, %8 : vector<1x1x256xi32>
    %c0_i32_3 = arith.constant 0 : i32
    %10 = vector.broadcast %c0_i32_3 : i32 to vector<1x1x256xi32>
    %11 = arith.cmpi slt, %7, %10 : vector<1x1x256xi32>
    %c0_i32_4 = arith.constant 0 : i32
    %12 = arith.cmpi slt, %5, %c0_i32_4 : i32
    %13 = vector.broadcast %12 : i1 to vector<1x1x256xi1>
    %14 = vector.broadcast %13 : vector<1x1x256xi1> to vector<1x1x256xi1>
    %15 = arith.xori %11, %14 : vector<1x1x256xi1>
    %16 = arith.andi %15, %9 : vector<1x1x256xi1>
    %17 = vector.broadcast %5 : i32 to vector<1x1x256xi32>
    %18 = arith.addi %7, %17 : vector<1x1x256xi32>
    %19 = arith.select %16, %18, %7 : vector<1x1x256xi1>, vector<1x1x256xi32>
    %c0_i32_5 = arith.constant 0 : i32
    %20 = vector.broadcast %c0_i32_5 : i32 to vector<1x1x256xi32>
    %21 = arith.cmpi ne, %19, %20 : vector<1x1x256xi32>
    %c15_i32 = arith.constant 15 : i32
    %22 = vector.broadcast %c15_i32 : i32 to vector<1x1x256xi32>
    %23 = arith.cmpi ne, %19, %22 : vector<1x1x256xi32>
    %c16_i32_6 = arith.constant 16 : i32
    %24 = vector.broadcast %c16_i32_6 : i32 to vector<1x1x256xi32>
    %25 = arith.cmpi sge, %1, %24 : vector<1x1x256xi32>
    %c240_i32 = arith.constant 240 : i32
    %26 = vector.broadcast %c240_i32 : i32 to vector<1x1x256xi32>
    %27 = arith.cmpi slt, %1, %26 : vector<1x1x256xi32>
    %cst = arith.constant dense<0.000000e+00> : vector<1x32xf32>
    %28 = vector.multi_reduction <add>, %0, %cst [2] : vector<1x32x256xf32> to vector<1x32xf32>
    %cst_7 = arith.constant 3.906250e-03 : f32
    %29 = vector.broadcast %cst_7 : f32 to vector<1x32xf32>
    %30 = arith.mulf %28, %29 : vector<1x32xf32>
    %c0_8 = arith.constant 0 : index
    %c0_9 = arith.constant 0 : index
    %31 = vector.load %arg2[%c0_8, %c0_9] : memref<32x8xf32, #tpu.memory_space<vmem>>, vector<32x8xf32>
    %cst_10 = arith.constant dense<0.000000e+00> : vector<1x8xf32>
    %32 = tpu.matmul %30, %31, %cst_10 {dimension_numbers = #tpu.dot_dimension_numbers<[1], [0], [0], [1], [0, 0, 1, 1], [], []>} : vector<1x32xf32>, vector<32x8xf32>, vector<1x8xf32> -> vector<1x8xf32>
    %cst_11 = arith.constant 0.000000e+00 : f32
    %33 = vector.broadcast %cst_11 : f32 to vector<1x8xf32>
    %34 = arith.maximumf %32, %33 : vector<1x8xf32>
    %c0_12 = arith.constant 0 : index
    %c0_13 = arith.constant 0 : index
    %35 = vector.load %arg3[%c0_12, %c0_13] : memref<8x32xf32, #tpu.memory_space<vmem>>, vector<8x32xf32>
    %cst_14 = arith.constant dense<0.000000e+00> : vector<1x32xf32>
    %36 = tpu.matmul %34, %35, %cst_14 {dimension_numbers = #tpu.dot_dimension_numbers<[1], [0], [0], [1], [0, 0, 1, 1], [], []>} : vector<1x8xf32>, vector<8x32xf32>, vector<1x32xf32> -> vector<1x32xf32>
    %cst_15 = arith.constant 5.000000e-01 : f32
    %37 = vector.broadcast %cst_15 : f32 to vector<1x32xf32>
    %38 = arith.mulf %37, %36 : vector<1x32xf32>
    %39 = math.tanh %38 : vector<1x32xf32>
    %cst_16 = arith.constant 1.000000e+00 : f32
    %40 = vector.broadcast %cst_16 : f32 to vector<1x32xf32>
    %41 = arith.addf %39, %40 : vector<1x32xf32>
    %cst_17 = arith.constant 5.000000e-01 : f32
    %42 = vector.broadcast %cst_17 : f32 to vector<1x32xf32>
    %43 = arith.mulf %42, %41 : vector<1x32xf32>
    %c16_i32_18 = arith.constant 16 : i32
    %44 = tpu.dynamic_rotate %0 by %c16_i32_18 dim 2 : vector<1x32x256xf32>, i32 -> vector<1x32x256xf32>
    %cst_19 = arith.constant 0.000000e+00 : f32
    %45 = vector.shape_cast %25 : vector<1x1x256xi1> to vector<1x1x256xi1>
    %46 = vector.broadcast %45 : vector<1x1x256xi1> to vector<1x32x256xi1>
    %47 = vector.broadcast %cst_19 : f32 to vector<1x32x256xf32>
    %48 = arith.select %46, %44, %47 : vector<1x32x256xi1>, vector<1x32x256xf32>
    %49 = arith.addf %0, %48 : vector<1x32x256xf32>
    %c240_i32_20 = arith.constant 240 : i32
    %50 = tpu.dynamic_rotate %0 by %c240_i32_20 dim 2 : vector<1x32x256xf32>, i32 -> vector<1x32x256xf32>
    %cst_21 = arith.constant 0.000000e+00 : f32
    %51 = vector.shape_cast %27 : vector<1x1x256xi1> to vector<1x1x256xi1>
    %52 = vector.broadcast %51 : vector<1x1x256xi1> to vector<1x32x256xi1>
    %53 = vector.broadcast %cst_21 : f32 to vector<1x32x256xf32>
    %54 = arith.select %52, %50, %53 : vector<1x32x256xi1>, vector<1x32x256xf32>
    %55 = arith.addf %49, %54 : vector<1x32x256xf32>
    %c1_i32_22 = arith.constant 1 : i32
    %56 = tpu.dynamic_rotate %55 by %c1_i32_22 dim 2 : vector<1x32x256xf32>, i32 -> vector<1x32x256xf32>
    %cst_23 = arith.constant 0.000000e+00 : f32
    %57 = vector.shape_cast %21 : vector<1x1x256xi1> to vector<1x1x256xi1>
    %58 = vector.broadcast %57 : vector<1x1x256xi1> to vector<1x32x256xi1>
    %59 = vector.broadcast %cst_23 : f32 to vector<1x32x256xf32>
    %60 = arith.select %58, %56, %59 : vector<1x32x256xi1>, vector<1x32x256xf32>
    %61 = arith.addf %55, %60 : vector<1x32x256xf32>
    %c255_i32 = arith.constant 255 : i32
    %62 = tpu.dynamic_rotate %55 by %c255_i32 dim 2 : vector<1x32x256xf32>, i32 -> vector<1x32x256xf32>
    %cst_24 = arith.constant 0.000000e+00 : f32
    %63 = vector.shape_cast %23 : vector<1x1x256xi1> to vector<1x1x256xi1>
    %64 = vector.broadcast %63 : vector<1x1x256xi1> to vector<1x32x256xi1>
    %65 = vector.broadcast %cst_24 : f32 to vector<1x32x256xf32>
    %66 = arith.select %64, %62, %65 : vector<1x32x256xi1>, vector<1x32x256xf32>
    %67 = arith.addf %61, %66 : vector<1x32x256xf32>
    %cst_25 = arith.constant 9.000000e+00 : f32
    %68 = vector.broadcast %cst_25 : f32 to vector<1x32x256xf32>
    %69 = arith.mulf %68, %0 : vector<1x32x256xf32>
    %70 = arith.subf %69, %67 : vector<1x32x256xf32>
    %cst_26 = arith.constant 0.000000e+00 : f32
    %71 = vector.shape_cast %3 : vector<1x1x256xi1> to vector<1x1x256xi1>
    %72 = vector.broadcast %71 : vector<1x1x256xi1> to vector<1x32x256xi1>
    %73 = vector.broadcast %cst_26 : f32 to vector<1x32x256xf32>
    %74 = arith.select %72, %70, %73 : vector<1x32x256xi1>, vector<1x32x256xf32>
    %cst_27 = arith.constant dense<0.000000e+00> : vector<1x32xf32>
    %75 = vector.multi_reduction <add>, %74, %cst_27 [2] : vector<1x32x256xf32> to vector<1x32xf32>
    %76 = vector.shape_cast %75 : vector<1x32xf32> to vector<1x32x1xf32>
    %cst_28 = arith.constant 3.906250e-03 : f32
    %77 = vector.broadcast %cst_28 : f32 to vector<1x32x1xf32>
    %78 = arith.mulf %76, %77 : vector<1x32x1xf32>
    %79 = vector.broadcast %78 : vector<1x32x1xf32> to vector<1x32x256xf32>
    %80 = arith.subf %74, %79 : vector<1x32x256xf32>
    %cst_29 = arith.constant 0.000000e+00 : f32
    %81 = vector.shape_cast %3 : vector<1x1x256xi1> to vector<1x1x256xi1>
    %82 = vector.broadcast %81 : vector<1x1x256xi1> to vector<1x32x256xi1>
    %83 = vector.broadcast %cst_29 : f32 to vector<1x32x256xf32>
    %84 = arith.select %82, %80, %83 : vector<1x32x256xi1>, vector<1x32x256xf32>
    %85 = arith.mulf %84, %84 : vector<1x32x256xf32>
    %cst_30 = arith.constant dense<0.000000e+00> : vector<1x32xf32>
    %86 = vector.multi_reduction <add>, %85, %cst_30 [2] : vector<1x32x256xf32> to vector<1x32xf32>
    %cst_31 = arith.constant 0.00392156886 : f32
    %87 = vector.broadcast %cst_31 : f32 to vector<1x32xf32>
    %88 = arith.mulf %86, %87 : vector<1x32xf32>
    %cst_32 = arith.constant 5.000000e-01 : f32
    %89 = vector.broadcast %cst_32 : f32 to vector<1x32xf32>
    %90 = arith.mulf %89, %88 : vector<1x32xf32>
    %91 = math.tanh %90 : vector<1x32xf32>
    %cst_33 = arith.constant 1.000000e+00 : f32
    %92 = vector.broadcast %cst_33 : f32 to vector<1x32xf32>
    %93 = arith.addf %91, %92 : vector<1x32xf32>
    %cst_34 = arith.constant 5.000000e-01 : f32
    %94 = vector.broadcast %cst_34 : f32 to vector<1x32xf32>
    %95 = arith.mulf %94, %93 : vector<1x32xf32>
    %96 = arith.mulf %43, %95 : vector<1x32xf32>
    %97 = vector.shape_cast %96 : vector<1x32xf32> to vector<1x32x1xf32>
    %98 = vector.broadcast %97 : vector<1x32x1xf32> to vector<1x32x256xf32>
    %99 = arith.mulf %0, %98 : vector<1x32x256xf32>
    %c0_35 = arith.constant 0 : index
    %c0_36 = arith.constant 0 : index
    %c0_37 = arith.constant 0 : index
    %100 = vector.load %arg4[%c0_35, %c0_36, %c0_37] : memref<1x32x256xf32, #tpu.memory_space<vmem>>, vector<1x32x256xf32>
    tpu.vector_store %arg4[%c0_35, %c0_36, %c0_37], %99 {strides = array<i32>} : memref<1x32x256xf32, #tpu.memory_space<vmem>>, vector<1x32x256xf32>,
    return
  }
  func.func @transform_0(%arg0: i32) -> (i32, i32, i32) {
    %c0_i32 = arith.constant 0 : i32
    %c0_i32_0 = arith.constant 0 : i32
    %c0_i32_1 = arith.constant 0 : i32
    return %arg0, %c0_i32, %c0_i32_0 : i32, i32, i32
  }
  func.func @transform_1(%arg0: i32) -> (i32, i32) {
    %c0_i32 = arith.constant 0 : i32
    %c0_i32_0 = arith.constant 0 : i32
    %c0_i32_1 = arith.constant 0 : i32
    return %c0_i32, %c0_i32_0 : i32, i32
  }
  func.func @transform_2(%arg0: i32) -> (i32, i32) {
    %c0_i32 = arith.constant 0 : i32
    %c0_i32_0 = arith.constant 0 : i32
    %c0_i32_1 = arith.constant 0 : i32
    return %c0_i32, %c0_i32_0 : i32, i32
  }
  func.func @transform_3(%arg0: i32) -> (i32, i32, i32) {
    %c0_i32 = arith.constant 0 : i32
    %c0_i32_0 = arith.constant 0 : i32
    %c0_i32_1 = arith.constant 0 : i32
    return %arg0, %c0_i32, %c0_i32_0 : i32, i32, i32
  }
}

</mosaic_0001>

<bundles_post_ra>
// kernel: tpu_custom_call.1
= control target key start
LH: loop header
LB: loop body
LE: loop exit
PB: predicated region body
PF: predicated region fallthrough
CT: control target
= control target key end

     0   :  { %8 = vsyncpa [#allocation3], 0  ;;  %s1598_s0 = inlined_call_operand.hbm [shape: f32[2,32,256], index: 0, kind: input, shape index: {}]   ;;  %s1599_s1 = inlined_call_operand.vmem [shape: f32[32,8], index: 1, kind: input, shape index: {}]   ;;  %s1600_s2 = inlined_call_operand.vmem [shape: f32[8,32], index: 2, kind: input, shape index: {}]   ;;  %s1601_s3 = inlined_call_operand.hbm [shape: f32[2,32,256], index: 3, kind: output, shape index: {}]  }
   0x1   :  { %10 = vsyncpa [#allocation3 + $0x1], 0 }
   0x2   :  { %11 = vsyncpa [#allocation4], 0 }
   0x3   :  { %13 = vsyncpa [#allocation4 + $0x1], 0  ;;  %s1106_s12 = smov 0   ;;  %s1108_s13 = smov 0  }
   0x4   :  { %s1110_s14 = smov 0   ;;  %s1112_s15 = smov 0  }
   0x5 LB: > { %s1127_s16 = sadd.s32 4294967295, %s1072_s15   ;;  %s863_s17 = sadd.s32 4294967294, %s1072_s15   ;;  %s1072_s15 = sphi %s1112_s15, %s1622_s15   ;;  %s1068_s14 = sphi %s1110_s14, %s1621_s14   ;;  %s1064_s13 = sphi %s1108_s13, %s1620_s13   ;;  %s1060_s12 = sphi %s1106_s12, %s1619_s12  }
   0x6   : > { %s1131_s18 = sadd.s32 1, %s1072_s15   ;;  %s26_s19 = sadd.s32 1, %s1068_s14 }
   0x7   : > { %s23_s20 = ssub.s32 %s1072_s15, %s1131_s18  ;;  %p33_p0 = scmp.ne.s32.totalorder %s1068_s14, %s1064_s13 }
   0x8   : > { %p24_p1 = scmp.eq.s32.totalorder %s23_s20, 0  ;;  %p34_p2 = scmp.eq.s32.totalorder %s1072_s15, 0 }
   0x9   : > { %p39_p3 = scmp.ne.s32.totalorder %s1064_s13, %s1060_s12  ;;  %p40_p4 = scmp.eq.s32.totalorder %s1127_s16, 0 }
   0xa   : > { %s1143_s21 = scalar_select %p24_p1, %s1068_s14, %s26_s19  }
   0xb   : > { %p1145_p5 = por %p34_p2, %p33_p0  ;;  %p1149_p6 = por %p40_p4, %p39_p3 }
   0xc   : > { %p105_p7 = scmp.eq.s32.totalorder %s1127_s16, 1  ;;  %p111_p8 = scmp.eq.s32.totalorder %s863_s17, 1 }
   0xd   : > { %p922_p10 = scmp.lt.s32.totalorder %s1072_s15, 2  ;;  %s137_s26 = sand.u32 1, %s1068_s14  }
   0xe   : > { %p1156_p11 = por %p105_p7, %p33_p0  ;;  %p1160_p12 = por %p111_p8, %p39_p3 }
   0xf   : > { %s879_s27 = sshll.u32 %s1072_s15, 10  ;;  %s866_s28 = sshll.u32 %s137_s26, 6 }
  0x10   : > { %s1605_s24 = scalar_select %p1156_p11, 1, 0 }
  0x11   : > { %s1606_s25 = scalar_select %p1160_p12, 1, 0 }
  0x12   : > { %s1169_s4 = scalar_lea.hbm %s1598_s0, %s879_s27  ;;  %s141_s5 = scalar_lea.vmem [#allocation2], %s866_s28 }
  0x13   : > { %s148_s6 = sshll.u32 %s141_s5, 4  ;;  %p1173_p13 = pnand %p922_p10, %p1145_p5  ;;  %s1177_s6 = int_to_ptr.vmem [resolvable:$true] %s148_s6 }
  0x14   : > { %s1179_s8 = scalar_lea.sflag [#allocation3], %s137_s26  ;;  %s976_s9 = scalar_lea.hbm %s1169_s4, 1024 }
  0x15   : > { %p977_p0 = scmp.ne.s32.totalorder %s1169_s4, %s976_s9  ;;  %p978_p1 = pneg %p1173_p13 }
  0x16   : > { %s981_s17 = scalar_lea.hbm %s1598_s0, 2048  ;;  %p982_p4 = scmp.lt.u32.totalorder %s1169_s4, %s1598_s0 }
  0x17   : > { %p979_p2 = pnand %p978_p1, %p977_p0  ;;  %p983_p5 = scmp.lt.u32.totalorder %s981_s17, %s976_s9 }
  0x18   : > { %p985_p8 = scmp.lt.u32.totalorder %s976_s9, %s1169_s4 }
  0x19   : > { %p980_p3 = pneg %p979_p2  ;;  %p984_p7 = por %p983_p5, %p982_p4 }
  0x1b   : > { %p986_p10 = por %p985_p8, %p984_p7 }
  0x1d   : > { %p987_p9 = pnand %p986_p10, %p980_p3 }
  0x1f   : > { %990 = shalt.err (!%p987_p9)
}
  0x20   : > { %s991_s22 = scalar_lea.vmem %s1177_s6, 1024  ;;  %s1074_s26 = smov [#allocation2]  }
  0x21   : > { %p992_p0 = scmp.ne.s32.totalorder %s1177_s6, %s991_s22  ;;  %s996_s27 = sshll.u32 %s1074_s26, 4  ;;  %s997_s27 = int_to_ptr.vmem [resolvable:$false] %s996_s27 }
  0x22   : > { %s998_s28 = scalar_lea.vmem %s997_s27, 2048  ;;  %p999_p11 = scmp.lt.s32.totalorder %s1177_s6, %s997_s27 }
  0x23   : > { %p994_p2 = pnand %p992_p0, %p978_p1  ;;  %p1000_p4 = scmp.lt.s32.totalorder %s998_s28, %s991_s22 }
  0x25   : > { %p995_p12 = pneg %p994_p2  ;;  %p1001_p5 = por %p1000_p4, %p999_p11 }
  0x27   : > { %p1002_p7 = pnand %p1001_p5, %p995_p12 }
  0x29   : > { %1005 = shalt.err (!%p1002_p7)
}
  0x2a   : > { %s1075_s29 = smov 256   ;;  %s1076_s30 = smov 16  }
  0x2b   : > { %917 = dma.hbm_to_vmem [thread:$0]  (!%p1173_p13), %s1169_s4, 1024, %s1177_s6, %s1179_s8, %s1075_s29, %s1075_s29, %s1076_s30  }
  0x2c   : > { %p869_p9 = scmp.ge.s32.totalorder %s1072_s15, 1  ;;  %p156_p1 = scmp.lt.s32.totalorder %s1072_s15, 3 }
  0x2e   : > { %p157_p3 = pnand %p869_p9, %p156_p1 }
  0x2f   : > { %s1210_s5 = sand.u32 (!%p157_p3), 1, %s1064_s13  }
  0x30   : > { %160 = sbr.rel (%p157_p3) target bundleno = 846 (0x34e), region = 32  ;;  %s870_s9 = sshll.u32 (!%p157_p3), %s1210_s5, 6 }
  0x31   : > { %s163_s10 = scalar_lea.sflag (!%p157_p3), [#allocation3], %s1210_s5  ;;  %s166_s11 = scalar_lea.vmem (!%p157_p3), [#allocation2], %s870_s9 }
  0x37   : > { %1051 = dma.done.wait (%p1149_p6), %s163_s10, 1024  }
  0x38   : > { %1053 = vsyncadd (%p1149_p6), %s163_s10, 4294966272  ;;  %v1220_v0 = vld [vmem:[%s166_s11 + $0x20] sm:$0xff]  ;;  %v1222_v1 = vld [vmem:[%s166_s11 + $0x28] sm:$0xff]  ;;  %v1077_v15 = vmov 0.0|0.0   ;;  %s1078_s22 = smov 16   ;;  %vm1079_vm0 = vmmov 0   ;;  %v197_v20 = vlaneseq }
  0x39   : > { %v1224_v2 = vld [vmem:[%s166_s11] sm:$0xff]  ;;  %v240_v3 = vadd.f32 %v1222_v1, %v1220_v0  ;;  %v1228_v4 = vld [vmem:[%s166_s11 + $0x8] sm:$0xff]  ;;  %v1230_v5 = vld [vmem:[%s166_s11 + $0x30] sm:$0xff]  ;;  %904 = vmatprep.subr.bf16.mxu0 %v1077_v15  ;;  %v1080_v19 = vmov 0.0   ;;  %s1081_s26 = smov 112   ;;  %vm267_vm1 = vcmask 130112  }
  0x3a   : > { %v1232_v6 = vld [vmem:[%s166_s11 + $0x38] sm:$0xff]  ;;  %v234_v7 = vadd.f32 %v1228_v4, %v1224_v2  ;;  %v1236_v8 = vld [vmem:[%s166_s11 + $0x10] sm:$0xff]  ;;  %v250_v12 = vld [vmem:[%s1599_s1] sm:$0xff]  ;;  %896 = vmatprep.mubr.msk.f32.mxu0 %vm1079_vm0, %v1080_v19  ;;  %899 = vmatprep.subr.mxu1 %v1080_v19  ;;  %v1280_v21 = vand.u32 127, %v197_v20  ;;  %v1282_v22 = vshrl.u32 %v197_v20, 7  ;;  %vm274_vm2 = vcmask 195712  }
  0x3b   : > { %v1238_v9 = vld [vmem:[%s166_s11 + $0x18] sm:$0xff]  ;;  %241 = vadd.xlane.f32.xlu1 %v240_v3  ;;  %v243_v10 = vadd.f32 %v1232_v6, %v1230_v5  ;;  %v251_v13 = vld [vmem:[%s1599_s1 + $0x8] sm:$0xff]  ;;  %v252_v16 = vld [vmem:[%s1599_s1 + $0x10] sm:$0xff]  ;;  %901 = vmatprep.mubr.msk.f32.mxu1 %vm1079_vm0, %v1080_v19  ;;  %vm281_vm3 = vcmask 261312   ;;  %vm283_vm4 = vcmask 261120   ;;  %s1082_s27 = smov 1  }
  0x3c   : > { %235 = vadd.xlane.f32.xlu0 %v234_v7  ;;  %v237_v11 = vadd.f32 %v1238_v9, %v1236_v8  ;;  %v905_v14 = vpack.c.bf16 %v251_v13, %v250_v12  ;;  %v253_v17 = vld [vmem:[%s1599_s1 + $0x18] sm:$0xff]  ;;  %v262_v24 = vadd.s32 4294967288, %v1280_v21  ;;  %v269_v25 = vadd.s32 4294967280, %v1280_v21  ;;  %s1083_s28 = smov 127   ;;  %s188_s10 = scalar_lea.vmem [#allocation5], %s870_s9 }
  0x3d   : > { %v908_v18 = vpack.c.bf16 %v253_v17, %v252_v16  ;;  %v1288_v27 = vsub.s32 %v1280_v21, %v1282_v22  ;;  %v276_v29 = vadd.s32 4294967272, %v1280_v21  ;;  %vm452_vm5 = vcmp.lt.s32.totalorder %v1280_v21, 16  ;;  %s790_s11 = sshll.u32 %s188_s10, 4  ;;  %s880_s23 = sshll.u32 %s1127_s16, 10  ;;  %s1546_s11 = int_to_ptr.vmem [resolvable:$true] %s790_s11 }
  0x3e   : > { %906 = vmatpush3.bf16.msra.mxu0 %v905_v14  ;;  %v1292_v31 = vsub.s32 %v262_v24, %v1282_v22  ;;  %v1295_v32 = vsub.s32 %v269_v25, %v1282_v22  ;;  %v1313_v52 = vadd.s32 128, %v1280_v21  ;;  %vm497_vm6 = vcmp.lt.s32.totalorder %v1280_v21, 112  ;;  %s1553_s6 = scalar_lea.hbm %s1601_s3, %s880_s23  ;;  %s777_s16 = scalar_lea.sflag [#allocation4], %s1210_s5 }
  0x3f   : > { %244 = vadd.xlane.f32.xlu1 %v243_v10  ;;  %907 = vmatprep.subr.bf16.mxu0 %v1077_v15  ;;  %v1299_v36 = vsub.s32 %v276_v29, %v1282_v22  ;;  %vm230_vm8 = vcmp.ge.s32.totalorder %v1280_v21, 16  ;;  %vm542_vm9 = vcmp.lt.s32.totalorder %v1280_v21, 1  ;;  %vm587_vm12 = vcmp.lt.s32.totalorder %v1280_v21, 127  ;;  %s1006_s7 = scalar_lea.vmem %s1546_s11, 1024  ;;  %p1616_p11 = scmp.ne.s32.totalorder %s1605_s24, 0 }
  0x40   : > { %238 = vadd.xlane.f32.xlu0 %v237_v11  ;;  %vm233_vm7 = vcmp.lt.s32.totalorder %v1313_v52, 240  ;;  %vm358_vm15 = vcmask 64512   ;;  %p1007_p6 = scmp.ne.s32.totalorder %s1546_s11, %s1006_s7  ;;  %s1084_s8 = smov [#allocation5]  }
  0x41   : > { %s1010_s17 = sshll.u32 %s1084_s8, 4  ;;  %s1011_s17 = int_to_ptr.vmem [resolvable:$false] %s1010_s17 }
  0x42   : > { %909 = vmatpush3.bf16.msra.mxu0 %v908_v18  ;;  %p1008_p12 = pnand %p1007_p6, %p1616_p11  ;;  %s1012_s19 = scalar_lea.vmem %s1011_s17, 2048 }
  0x43   : > { %p1013_p8 = scmp.lt.s32.totalorder %s1546_s11, %s1011_s17  ;;  %p1014_p10 = scmp.lt.s32.totalorder %s1012_s19, %s1006_s7 }
  0x44   : > { %p1009_p13 = pneg %p1008_p12 }
  0x45   : > { %p1015_p0 = por %p1014_p10, %p1013_p8 }
  0x47   : > { %p1016_p2 = pnand %p1015_p0, %p1009_p13 }
  0x50   : > { %438 = vrot.lane.b32.xlu1 %v1236_v8, %s1078_s22 }
  0x54   : > { %444 = vrot.lane.b32.xlu1 %v1228_v4, %s1078_s22 }
  0x56   : > { %436 = vrot.lane.b32.xlu0 %v1224_v2, %s1078_s22 }
  0x58   : > { %446 = vrot.lane.b32.xlu1 %v1238_v9, %s1078_s22 }
  0x5a   : > { %440 = vrot.lane.b32.xlu0 %v1220_v0, %s1078_s22 }
  0x5c   : > { %448 = vrot.lane.b32.xlu1 %v1222_v1, %s1078_s22 }
  0x5e   : > { %442 = vrot.lane.b32.xlu0 %v1230_v5, %s1078_s22 }
  0x60   : > { %450 = vrot.lane.b32.xlu1 %v1232_v6, %s1078_s22 }
  0x62   : > { %481 = vrot.lane.b32.xlu0 %v1224_v2, %s1081_s26 }
  0x64   : > { %483 = vrot.lane.b32.xlu1 %v1236_v8, %s1081_s26 }
  0x66   : > { %489 = vrot.lane.b32.xlu0 %v1228_v4, %s1081_s26 }
  0x68   : > { %491 = vrot.lane.b32.xlu1 %v1238_v9, %s1081_s26 }
  0x6a   : > { %485 = vrot.lane.b32.xlu0 %v1220_v0, %s1081_s26 }
  0x6c   : > { %493 = vrot.lane.b32.xlu1 %v1222_v1, %s1081_s26 }
  0x6e   : > { %487 = vrot.lane.b32.xlu0 %v1230_v5, %s1081_s26 }
  0x70   : > { %495 = vrot.lane.b32.xlu1 %v1232_v6, %s1081_s26 }
  0xc8   : > { %v242_v23 = vpop.xlane.xlu1 %241 }
  0xc9   : > { %v236_v26 = vpop.xlane.xlu0 %235  ;;  %v248_v33 = vmul.f32 0.00390625, %v242_v23 }
  0xca   : > { %v246_v28 = vmul.f32 0.00390625, %v236_v26 }
  0xcb   : > { %v273_v41 = vrot.slane %v248_v33, %v1295_v32 }
  0xcc   : > { %v245_v30 = vpop.xlane.xlu1 %244  ;;  %v261_v35 = vrot.slane %v246_v28, %v1288_v27 }
  0xcd   : > { %v239_v34 = vpop.xlane.xlu0 %238  ;;  %v249_v37 = vmul.f32 0.00390625, %v245_v30 }
  0xce   : > { %v247_v38 = vmul.f32 0.00390625, %v239_v34 }
  0xcf   : > { %v280_v43 = vrot.slane %v249_v37, %v1299_v36 }
  0xd0   : > { %v266_v39 = vrot.slane %v247_v38, %v1292_v31  ;;  %v1302_v40 = vpop.permute.xlu1 %438 }
  0xd1   : > { %v437_v42 = vpop.permute.xlu0 %436 }
  0xd2   : > { %v268_v44 = vsel %vm267_vm1, %v266_v39, %v261_v35 }
  0xd3   : > { %v275_v45 = vsel %vm274_vm2, %v273_v41, %v268_v44 }
  0xd4   : > { %v445_v46 = vpop.permute.xlu1 %444  ;;  %v282_v47 = vsel %vm281_vm3, %v280_v43, %v275_v45 }
  0xd5   : > { %897 = vmatmul.mubr.msk.f32.vlgmr.msra.gmra.mrb[0].mxu0 %vm283_vm4, %v282_v47  ;;  %v441_v48 = vpop.permute.xlu0 %440  ;;  %v453_v54 = vsel %vm452_vm5, %v437_v42, %v445_v46  ;;  %v457_v60 = vsel %vm452_vm5, %v445_v46, %v437_v42 }
  0xd6   : > { %v474_v57 = vadd.f32 %v453_v54, %v1228_v4  ;;  %v465_v7 = vsel %vm230_vm8, %v457_v60, 0.0 }
  0xd7   : > { %v473_v16 = vadd.f32 %v465_v7, %v1224_v2 }
  0xd8   : > { %v1309_v49 = vpop.permute.xlu1 %446 }
  0xd9   : > { %v443_v50 = vpop.permute.xlu0 %442  ;;  %v454_v63 = vsel %vm452_vm5, %v1302_v40, %v1309_v49 }
  0xda   : > { %v476_v12 = vadd.f32 %v454_v63, %v1238_v9 }
  0xdc   : > { %v449_v51 = vpop.permute.xlu1 %448 }
  0xdd   : > { %v482_v53 = vpop.permute.xlu0 %481  ;;  %v459_v3 = vsel %vm452_vm5, %v449_v51, %v441_v48  ;;  %v455_v17 = vsel %vm452_vm5, %v441_v48, %v449_v51  ;;  %v458_v48 = vsel %vm452_vm5, %v1309_v49, %v1302_v40  ;;  %v357_v49 = vld [vmem:[%s1600_s2] sm:$0xff] }
  0xde   : > { %v469_v13 = vsel %vm230_vm8, %v459_v3, 0.0  ;;  %v478_v26 = vadd.f32 %v455_v17, %v1222_v1  ;;  %900 = vmatpush3.msra.mxu1 %v357_v49 }
  0xdf   : > { %v477_v23 = vadd.f32 %v469_v13, %v1220_v0 }
  0xe0   : > { %v451_v55 = vpop.permute.xlu1 %450 }
  0xe1   : > { %v490_v56 = vpop.permute.xlu0 %489  ;;  %v460_v18 = vsel %vm452_vm5, %v451_v55, %v443_v50  ;;  %v456_v33 = vsel %vm452_vm5, %v443_v50, %v451_v55  ;;  %v467_v50 = vsel %vm230_vm8, %v458_v48, 0.0  ;;  %v621_v48 = vmul.f32 9.0, %v1222_v1 }
  0xe2   : > { %v502_v58 = vsel %vm497_vm6, %v490_v56, %v482_v53  ;;  %v498_v14 = vsel %vm497_vm6, %v482_v53, %v490_v56  ;;  %v471_v28 = vsel %vm230_vm8, %v460_v18, 0.0  ;;  %v480_v42 = vadd.f32 %v456_v33, %v1232_v6 }
  0xe3   : > { %v511_v59 = vsel %vm233_vm7, %v502_v58, 0.0  ;;  %v1358_v24 = vadd.f32 %v498_v14, %v473_v16  ;;  %v479_v39 = vadd.f32 %v471_v28, %v1230_v5  ;;  %v475_v53 = vadd.f32 %v467_v50, %v1236_v8 }
  0xe4   : > { %v1327_v61 = vadd.f32 %v511_v59, %v474_v57  ;;  %v484_v62 = vpop.permute.xlu1 %483  ;;  %v206_v58 = vand.u32 15, %v1280_v21  ;;  %v213_v59 = vand.u32 15, %v1313_v52  ;;  %v617_v28 = vmul.f32 9.0, %v1228_v4 }
  0xe5   : > { %v486_v11 = vpop.permute.xlu0 %485 }
  0xe6   : > { %534 = vrot.lane.b32.xlu0 %v1327_v61, %s1082_s27  ;;  %vm1432_vm10 = vcmp.ne.s32.totalorder %v206_v58, 0  ;;  %vm1436_vm11 = vcmp.ne.s32.totalorder %v213_v59, 0  ;;  %vm1453_vm13 = vcmp.ne.s32.totalorder %v206_v58, 15  ;;  %vm1457_vm14 = vcmp.ne.s32.totalorder %v213_v59, 15 }
  0xe8   : > { %v492_v10 = vpop.permute.xlu1 %491 }
  0xe9   : > { %v503_v15 = vsel %vm497_vm6, %v492_v10, %v484_v62  ;;  %v488_v37 = vpop.permute.xlu0 %487  ;;  %v499_v51 = vsel %vm497_vm6, %v484_v62, %v492_v10 }
  0xea   : > { %v513_v19 = vsel %vm233_vm7, %v503_v15, 0.0  ;;  %579 = vrot.lane.b32.xlu0 %v1327_v61, %s1083_s28  ;;  %v1416_v40 = vadd.f32 %v499_v51, %v475_v53 }
  0xeb   : > { %v1355_v20 = vadd.f32 %v513_v19, %v476_v12 }
  0xec   : > { %v494_v25 = vpop.permute.xlu1 %493 }
  0xed   : > { %v500_v29 = vsel %vm497_vm6, %v486_v11, %v494_v25  ;;  %v504_v30 = vsel %vm497_vm6, %v494_v25, %v486_v11  ;;  %536 = vrot.lane.b32.xlu1 %v1355_v20, %s1082_s27 }
  0xee   : > { %v515_v34 = vsel %vm233_vm7, %v504_v30, 0.0  ;;  %v1373_v35 = vadd.f32 %v500_v29, %v477_v23  ;;  %526 = vrot.lane.b32.xlu0 %v1358_v24, %s1082_s27 }
  0xef   : > { %v1377_v38 = vadd.f32 %v515_v34, %v478_v26  ;;  %v616_v26 = vmul.f32 9.0, %v1224_v2 }
  0xf0   : > { %v496_v41 = vpop.permute.xlu1 %495 }
  0xf1   : > { %v501_v43 = vsel %vm497_vm6, %v488_v37, %v496_v41  ;;  %v505_v44 = vsel %vm497_vm6, %v496_v41, %v488_v37  ;;  %538 = vrot.lane.b32.xlu1 %v1377_v38, %s1082_s27 }
  0xf2   : > { %v517_v45 = vsel %vm233_vm7, %v505_v44, 0.0  ;;  %v1389_v46 = vadd.f32 %v501_v43, %v479_v39  ;;  %530 = vrot.lane.b32.xlu0 %v1373_v35, %s1082_s27 }
  0xf3   : > { %v1393_v47 = vadd.f32 %v517_v45, %v480_v42  ;;  %v620_v45 = vmul.f32 9.0, %v1220_v0 }
  0xf5   : > { %540 = vrot.lane.b32.xlu1 %v1393_v47, %s1082_s27 }
  0xf6   : > { %532 = vrot.lane.b32.xlu0 %v1389_v46, %s1082_s27 }
  0xf9   : > { %581 = vrot.lane.b32.xlu1 %v1355_v20, %s1083_s28 }
  0xfa   : > { %571 = vrot.lane.b32.xlu0 %v1358_v24, %s1083_s28 }
  0xfd   : > { %583 = vrot.lane.b32.xlu1 %v1377_v38, %s1083_s28 }
  0xfe   : > { %575 = vrot.lane.b32.xlu0 %v1373_v35, %s1083_s28 }
 0x101   : > { %528 = vrot.lane.b32.xlu1 %v1416_v40, %s1082_s27 }
 0x102   : > { %577 = vrot.lane.b32.xlu0 %v1389_v46, %s1083_s28 }
 0x105   : > { %573 = vrot.lane.b32.xlu1 %v1416_v40, %s1083_s28 }
 0x109   : > { %585 = vrot.lane.b32.xlu1 %v1393_v47, %s1083_s28 }
 0x158   : > { %v535_v54 = vpop.permute.xlu0 %534 }
 0x15c   : > { %v580_v55 = vpop.permute.xlu0 %579 }
 0x15f   : > { %v537_v56 = vpop.permute.xlu1 %536 }
 0x160   : > { %v527_v57 = vpop.permute.xlu0 %526 }
 0x161   : > { %v543_v7 = vsel %vm542_vm9, %v527_v57, %v535_v54  ;;  %v547_v10 = vsel %vm542_vm9, %v535_v54, %v527_v57 }
 0x162   : > { %v555_v12 = vsel %vm1432_vm10, %v547_v10, 0.0  ;;  %v556_v13 = vsel %vm1436_vm11, %v543_v7, 0.0 }
 0x163   : > { %v539_v60 = vpop.permute.xlu1 %538  ;;  %v563_v19 = vadd.f32 %v555_v12, %v1358_v24  ;;  %v564_v23 = vadd.f32 %v556_v13, %v1327_v61 }
 0x164   : > { %v531_v62 = vpop.permute.xlu0 %530 }
 0x165   : > { %v545_v14 = vsel %vm542_vm9, %v531_v62, %v539_v60  ;;  %v549_v15 = vsel %vm542_vm9, %v539_v60, %v531_v62 }
 0x166   : > { %v559_v29 = vsel %vm1432_vm10, %v549_v15, 0.0  ;;  %v560_v30 = vsel %vm1436_vm11, %v545_v14, 0.0  ;;  %v618_v15 = vmul.f32 9.0, %v1236_v8 }
 0x167   : > { %v541_v11 = vpop.permute.xlu1 %540  ;;  %v567_v42 = vadd.f32 %v559_v29, %v1373_v35  ;;  %v568_v43 = vadd.f32 %v560_v30, %v1377_v38 }
 0x168   : > { %v533_v52 = vpop.permute.xlu0 %532 }
 0x169   : > { %v546_v59 = vsel %vm542_vm9, %v533_v52, %v541_v11  ;;  %v550_v60 = vsel %vm542_vm9, %v541_v11, %v533_v52 }
 0x16a   : > { %v561_v11 = vsel %vm1432_vm10, %v550_v60, 0.0  ;;  %v562_v52 = vsel %vm1436_vm11, %v546_v59, 0.0 }
 0x16b   : > { %v582_v16 = vpop.permute.xlu1 %581 }
 0x16c   : > { %v572_v25 = vpop.permute.xlu0 %571 }
 0x16d   : > { %v588_v33 = vsel %vm587_vm12, %v572_v25, %v580_v55  ;;  %v592_v34 = vsel %vm587_vm12, %v580_v55, %v572_v25 }
 0x16e   : > { %v600_v61 = vsel %vm1453_vm13, %v588_v33, 0.0  ;;  %v601_v24 = vsel %vm1457_vm14, %v592_v34, 0.0  ;;  %v569_v34 = vadd.f32 %v561_v11, %v1389_v46 }
 0x16f   : > { %v608_v37 = vadd.f32 %v600_v61, %v563_v19  ;;  %v609_v39 = vadd.f32 %v601_v24, %v564_v23  ;;  %v584_v41 = vpop.permute.xlu1 %583  ;;  %v622_v24 = vmul.f32 9.0, %v1230_v5 }
 0x170   : > { %v576_v44 = vpop.permute.xlu0 %575 }
 0x171   : > { %v590_v50 = vsel %vm587_vm12, %v576_v44, %v584_v41  ;;  %v594_v51 = vsel %vm587_vm12, %v584_v41, %v576_v44  ;;  %v624_v53 = vsub.f32 %v616_v26, %v608_v37  ;;  %v625_v49 = vsub.f32 %v617_v28, %v609_v39 }
 0x172   : > { %v604_v54 = vsel %vm1453_vm13, %v590_v50, 0.0  ;;  %v605_v35 = vsel %vm1457_vm14, %v594_v51, 0.0  ;;  %v623_v37 = vmul.f32 9.0, %v1232_v6 }
 0x173   : > { %v612_v38 = vadd.f32 %v604_v54, %v567_v42  ;;  %v613_v55 = vadd.f32 %v605_v35, %v568_v43  ;;  %v529_v57 = vpop.permute.xlu1 %528  ;;  %v644_v58 = vadd.f32 %v625_v49, %v624_v53 }
 0x174   : > { %v544_v62 = vsel %vm542_vm9, %v529_v57, %v537_v56  ;;  %v548_v7 = vsel %vm542_vm9, %v537_v56, %v529_v57  ;;  %v619_v56 = vmul.f32 9.0, %v1238_v9 }
 0x175   : > { %v557_v10 = vsel %vm1432_vm10, %v548_v7, 0.0  ;;  %v558_v12 = vsel %vm1436_vm11, %v544_v62, 0.0  ;;  %645 = vadd.xlane.f32.xlu0 %v644_v58  ;;  %v628_v13 = vsub.f32 %v620_v45, %v612_v38  ;;  %v629_v14 = vsub.f32 %v621_v48, %v613_v55 }
 0x176   : > { %v565_v25 = vadd.f32 %v557_v10, %v1416_v40  ;;  %v566_v26 = vadd.f32 %v558_v12, %v1355_v20  ;;  %v570_v40 = vadd.f32 %v562_v52, %v1393_v47  ;;  %v578_v20 = vpop.permute.xlu0 %577 }
 0x177   : > { %v574_v19 = vpop.permute.xlu1 %573  ;;  %v650_v23 = vadd.f32 %v629_v14, %v628_v13 }
 0x178   : > { %v589_v28 = vsel %vm587_vm12, %v574_v19, %v582_v16  ;;  %v593_v29 = vsel %vm587_vm12, %v582_v16, %v574_v19 }
 0x179   : > { %v602_v63 = vsel %vm1453_vm13, %v589_v28, 0.0  ;;  %v603_v3 = vsel %vm1457_vm14, %v593_v29, 0.0  ;;  %651 = vadd.xlane.f32.xlu0 %v650_v23 }
 0x17a   : > { %v610_v30 = vadd.f32 %v602_v63, %v565_v25  ;;  %v611_v33 = vadd.f32 %v603_v3, %v566_v26 }
 0x17b   : > { %v586_v61 = vpop.permute.xlu1 %585 }
 0x17c   : > { %v591_v16 = vsel %vm587_vm12, %v578_v20, %v586_v61  ;;  %v595_v39 = vsel %vm587_vm12, %v586_v61, %v578_v20  ;;  %v626_v41 = vsub.f32 %v618_v15, %v610_v30  ;;  %v627_v42 = vsub.f32 %v619_v56, %v611_v33 }
 0x17d   : > { %v606_v43 = vsel %vm1453_vm13, %v591_v16, 0.0  ;;  %v607_v46 = vsel %vm1457_vm14, %v595_v39, 0.0 }
 0x17e   : > { %v614_v47 = vadd.f32 %v606_v43, %v569_v34  ;;  %v615_v44 = vadd.f32 %v607_v46, %v570_v40  ;;  %v647_v45 = vadd.f32 %v627_v42, %v626_v41 }
 0x180   : > { %648 = vadd.xlane.f32.xlu1 %v647_v45  ;;  %v630_v48 = vsub.f32 %v622_v24, %v614_v47  ;;  %v631_v50 = vsub.f32 %v623_v37, %v615_v44 }
 0x182   : > { %v653_v51 = vadd.f32 %v631_v50, %v630_v48 }
 0x184   : > { %654 = vadd.xlane.f32.xlu0 %v653_v51 }
 0x1a8   : > { %v352_v54 = vpop.f32.mrb[0].mxu0 }
 0x1a9   : > { %v356_v21 = vmax.f32 %v352_v54, 0.0  ;;  %v898_v35 = vpop.f32.mrb[1].mxu0 }
 0x1ab   : > { %902 = vmatmul.mubr.msk.f32.vlgmr.msra.gmra.mrb[0].mxu1 %vm358_vm15, %v356_v21 }
 0x202   : > { %v646_v38 = vpop.xlane.xlu0 %645 }
 0x203   : > { %v656_v55 = vmul.f32 0.00390625, %v646_v38 }
 0x205   : > { %v660_v17 = vsub.f32 %v624_v53, %v656_v55  ;;  %v661_v57 = vsub.f32 %v625_v49, %v656_v55 }
 0x206   : > { %v652_v58 = vpop.xlane.xlu0 %651 }
 0x207   : > { %v676_v18 = vmul.f32 %v660_v17, %v660_v17  ;;  %v677_v59 = vmul.f32 %v661_v57, %v661_v57  ;;  %v658_v60 = vmul.f32 0.00390625, %v652_v58 }
 0x209   : > { %v664_v62 = vsub.f32 %v628_v13, %v658_v60  ;;  %v665_v7 = vsub.f32 %v629_v14, %v658_v60  ;;  %v684_v10 = vadd.f32 %v677_v59, %v676_v18 }
 0x20b   : > { %v680_v12 = vmul.f32 %v664_v62, %v664_v62  ;;  %v681_v15 = vmul.f32 %v665_v7, %v665_v7  ;;  %685 = vadd.xlane.f32.xlu0 %v684_v10 }
 0x20d   : > { %v649_v11 = vpop.xlane.xlu1 %648  ;;  %v690_v52 = vadd.f32 %v681_v15, %v680_v12 }
 0x20e   : > { %v657_v19 = vmul.f32 0.00390625, %v649_v11  ;;  %v743_v11 = vsub.s32 0, %v1282_v22 }
 0x20f   : > { %691 = vadd.xlane.f32.xlu0 %v690_v52 }
 0x210   : > { %v662_v23 = vsub.f32 %v626_v41, %v657_v19  ;;  %v663_v56 = vsub.f32 %v627_v42, %v657_v19 }
 0x211   : > { %v655_v25 = vpop.xlane.xlu0 %654 }
 0x212   : > { %v678_v26 = vmul.f32 %v662_v23, %v662_v23  ;;  %v679_v53 = vmul.f32 %v663_v56, %v663_v56  ;;  %v659_v49 = vmul.f32 0.00390625, %v655_v25 }
 0x214   : > { %v666_v28 = vsub.f32 %v630_v48, %v659_v49  ;;  %v667_v29 = vsub.f32 %v631_v50, %v659_v49  ;;  %v687_v63 = vadd.f32 %v679_v53, %v678_v26 }
 0x216   : > { %v682_v3 = vmul.f32 %v666_v28, %v666_v28  ;;  %v683_v13 = vmul.f32 %v667_v29, %v667_v29  ;;  %688 = vadd.xlane.f32.xlu1 %v687_v63 }
 0x218   : > { %v693_v14 = vadd.f32 %v683_v13, %v682_v3 }
 0x21a   : > { %694 = vadd.xlane.f32.xlu1 %v693_v14 }
 0x27e   : > { %v428_v30 = vpop.f32.mrb[0].mxu1 }
 0x27f   : > { %v903_v33 = vpop.f32.mrb[1].mxu1  ;;  %v432_v42 = vmul.f32 0.5, %v428_v30 }
 0x298   : > { %v686_v34 = vpop.xlane.xlu0 %685 }
 0x299   : > { %v696_v40 = vmul.f32 0.003921569, %v686_v34 }
 0x29b   : > { %v700_v24 = vmul.f32 0.5, %v696_v40 }
 0x29c   : > { %v692_v20 = vpop.xlane.xlu0 %691 }
 0x29d   : > { %v698_v61 = vmul.f32 0.003921569, %v692_v20  ;;  %966 = vtanh.f32 %v700_v24 }
 0x29f   : > { %v702_v37 = vmul.f32 0.5, %v698_v61 }
 0x2a1   : > { %968 = vtanh.f32 %v702_v37 }
 0x2a3   : > { %v689_v16 = vpop.xlane.xlu1 %688 }
 0x2a4   : > { %v697_v39 = vmul.f32 0.003921569, %v689_v16 }
 0x2a6   : > { %v701_v41 = vmul.f32 0.5, %v697_v39 }
 0x2a7   : > { %v695_v43 = vpop.xlane.xlu1 %694  ;;  %v967_v44 = vpop.eup %966 }
 0x2a8   : > { %970 = vtanh.f32 %v701_v41  ;;  %v699_v46 = vmul.f32 0.003921569, %v695_v43  ;;  %v708_v48 = vadd.f32 1.0, %v967_v44 }
 0x2a9   : > { %972 = vtanh.f32 %v432_v42 }
 0x2aa   : > { %v703_v47 = vmul.f32 0.5, %v699_v46  ;;  %v712_v54 = vmul.f32 0.5, %v708_v48 }
 0x2ab   : > { %v969_v45 = vpop.eup %968 }
 0x2ac   : > { %974 = vtanh.f32 %v703_v47  ;;  %v710_v51 = vadd.f32 1.0, %v969_v45  ;;  %v723_v57 = vrot.slane %v712_v54, %v1288_v27 }
 0x2ae   : > { %v714_v17 = vmul.f32 0.5, %v710_v51 }
 0x2b0   : > { %v732_v7 = vrot.slane %v714_v17, %v1295_v32 }
 0x2b2   : > { %v971_v50 = vpop.eup %970 }
 0x2b3   : > { %v709_v21 = vadd.f32 1.0, %v971_v50  ;;  %v973_v35 = vpop.eup %972 }
 0x2b4   : > { %v434_v59 = vadd.f32 1.0, %v973_v35 }
 0x2b5   : > { %v713_v38 = vmul.f32 0.5, %v709_v21 }
 0x2b6   : > { %v975_v55 = vpop.eup %974  ;;  %v435_v12 = vmul.f32 0.5, %v434_v59 }
 0x2b7   : > { %v727_v58 = vrot.slane %v713_v38, %v1292_v31  ;;  %v711_v18 = vadd.f32 1.0, %v975_v55 }
 0x2b9   : > { %v728_v60 = vsel %vm267_vm1, %v727_v58, %v723_v57  ;;  %v715_v62 = vmul.f32 0.5, %v711_v18 }
 0x2ba   : > { %v733_v15 = vsel %vm274_vm2, %v732_v7, %v728_v60 }
 0x2bb   : > { %v737_v10 = vrot.slane %v715_v62, %v1299_v36 }
 0x2bd   : > { %v738_v52 = vsel %vm281_vm3, %v737_v10, %v733_v15 }
 0x2be   : > { %v740_v27 = vmul.f32 %v738_v52, %v435_v12 }
 0x2c0   : > { %v744_v19 = vrot.slane %v740_v27, %v743_v11 }
 0x2c2   : > { %750 = vbcast.lane.b32.xlu1 %v744_v19, 264  ;;  %746 = vbcast.lane.b32.xlu0 %v744_v19, 256 }
 0x2c6   : > { %754 = vbcast.lane.b32.xlu1 %v744_v19, 272 }
 0x2ca   : > { %758 = vbcast.lane.b32.xlu1 %v744_v19, 280 }
 0x334   : > { %v751_v31 = vpop.permute.xlu1 %750  ;;  %v747_v23 = vpop.permute.xlu0 %746 }
 0x335   : > { %v762_v32 = vmul.f32 %v751_v31, %v1236_v8  ;;  %v763_v36 = vmul.f32 %v751_v31, %v1238_v9  ;;  %v760_v56 = vmul.f32 %v747_v23, %v1224_v2  ;;  %v761_v25 = vmul.f32 %v747_v23, %v1228_v4 }
 0x337   : > { %770 = vst [vmem:[%s188_s10 + $0x10] sm:$0xff] %v762_v32  ;;  %771 = vst [vmem:[%s188_s10 + $0x18] sm:$0xff] %v763_v36 }
 0x338   : > { %768 = vst [vmem:[%s188_s10] sm:$0xff] %v760_v56  ;;  %769 = vst [vmem:[%s188_s10 + $0x8] sm:$0xff] %v761_v25  ;;  %v755_v22 = vpop.permute.xlu1 %754 }
 0x339   : > { %v764_v26 = vmul.f32 %v755_v22, %v1220_v0  ;;  %v765_v8 = vmul.f32 %v755_v22, %v1222_v1 }
 0x33b   : > { %772 = vst [vmem:[%s188_s10 + $0x20] sm:$0xff] %v764_v26  ;;  %773 = vst [vmem:[%s188_s10 + $0x28] sm:$0xff] %v765_v8 }
 0x33c   : > { %v759_v2 = vpop.permute.xlu1 %758 }
 0x33d   : > { %v766_v4 = vmul.f32 %v759_v2, %v1230_v5  ;;  %v767_v9 = vmul.f32 %v759_v2, %v1232_v6 }
 0x33f   : > { %774 = vst [vmem:[%s188_s10 + $0x30] sm:$0xff] %v766_v4  ;;  %775 = vst [vmem:[%s188_s10 + $0x38] sm:$0xff] %v767_v9 }
 0x340   : > { %1019 = shalt.err (!%p1016_p2)
}
 0x341   : > { %s1020_s20 = scalar_lea.hbm %s1553_s6, 1024  ;;  %s1024_s28 = scalar_lea.hbm %s1601_s3, 2048 }
 0x342   : > { %p1021_p4 = scmp.ne.s32.totalorder %s1553_s6, %s1020_s20  ;;  %p1025_p9 = scmp.lt.u32.totalorder %s1553_s6, %s1601_s3 }
 0x343   : > { %p1026_p1 = scmp.lt.u32.totalorder %s1024_s28, %s1020_s20  ;;  %p1028_p6 = scmp.lt.u32.totalorder %s1020_s20, %s1553_s6 }
 0x344   : > { %p1022_p5 = pnand %p1021_p4, %p1616_p11 }
 0x345   : > { %p1027_p3 = por %p1026_p1, %p1025_p9 }
 0x346   : > { %p1023_p7 = pneg %p1022_p5 }
 0x347   : > { %p1029_p12 = por %p1028_p6, %p1027_p3 }
 0x349   : > { %p1030_p13 = pnand %p1029_p12, %p1023_p7 }
 0x34b   : > { %1033 = shalt.err (!%p1030_p13)
}
 0x34c   : > { %s1085_s10 = smov 256  }
 0x34d   : > { %912 = dma.vmem_to_hbm [thread:$0]  (%p1616_p11), %s1546_s11, 1024, %s1553_s6, %s777_s16, %s1085_s10, %s1085_s10, %s1078_s22  }
 0x34e PF: > { %s805_s23 = sand.u32 1, %s1060_s12   ;;  %p1617_p8 = scmp.ne.s32.totalorder %s1606_s25, 0 }
 0x34f   : > { %p1618_p10 = scmp.ge.s32.totalorder %s1072_s15, 2  ;;  %s806_s9 = scalar_lea.sflag [#allocation4], %s805_s23 }
 0x351   : > { %p919_p0 = pnand %p1618_p10, %p1617_p8 }
 0x353   : > { %1055 = dma.done.wait (!%p919_p0), %s806_s9, 1024  }
 0x354   : > { %1057 = vsyncadd (!%p919_p0), %s806_s9, 4294966272  ;;  %p16_p2 = scmp.ge.s32.totalorder %s1131_s18, 4   ;;  %s1619_s12 = smov %s1064_s13 }
 0x355   : > { %s1620_s13 = smov %s1068_s14  ;;  %s1621_s14 = smov %s1143_s21 }
 0x356   : > { %s1622_s15 = smov %s1131_s18  ;;  %18 = sbr.rel (!%p16_p2) target bundleno = 5 (0x5), region = 77 }
 0x35d   :  { %811 = vsyncpa [#allocation3], 1 }
 0x35e   :  { %813 = vsyncpa [#allocation3 + $0x1], 1 }
 0x35f   :  { %814 = vsyncpa [#allocation4], 1 }
 0x360   :  { %816 = vsyncpa [#allocation4 + $0x1], 1 }

</bundles_post_ra>
